<compile_context>
chip_gen: v7x
topology: tpu7x:2x2x1
jax: 0.10.0
libtpu: 0.0.40
codegen_flags: <defaults>
</compile_context>

<pallas_src>
import functools
import math

import jax
import jax.numpy as jnp
from jax.experimental import pallas as pl
from jax.experimental.pallas import tpu as pltpu

_LANE = 128
_TARGET_TILE_BYTES = 2 * 1024 * 1024  # per VMEM buffer (in + out, double buffered)


def _scale_kernel(x_ref, o_ref, *, scale: float, compute_dtype):
    # Pure VPU elementwise hot path: multiply in `compute_dtype`, cast on store.
    x = x_ref[...].astype(compute_dtype)
    o_ref[...] = (x * jnp.asarray(scale, compute_dtype)).astype(o_ref.dtype)


def _sublane(itemsize: int) -> int:
    # Sublane packing: 8 rows for 32-bit, 16 for 16-bit, 32 for 8-bit dtypes.
    return {4: 8, 2: 16, 1: 32}.get(itemsize, 8)


def _choose_2d_layout(total: int, orig_shape):
    """Pick a lane-dense (rows, cols) factorization of `total` elements."""
    # Prefer a trailing dim that's a large multiple of 128 AND leaves >= 8 rows
    # (dense in both lane and sublane directions); then relax the row demand.
    for want_rows in (8, 1):
        for c in (2048, 1024, 512, 256, 128):
            if total % c == 0 and total // c >= want_rows:
                return total // c, c
    # Fallback: keep the original trailing dim (full-extent blocks are legal
    # even when not (8,128)-aligned).
    if orig_shape and orig_shape[-1] > 0:
        return total // orig_shape[-1], orig_shape[-1]
    return 1, total


def scale(x: jax.Array, scale_val: float = 255.0, *, donate_input: bool = False) -> jax.Array:
    """Pallas TPU equivalent of rajo `Scale`: returns x * scale_val."""
    orig_shape = x.shape

    if jnp.issubdtype(x.dtype, jnp.floating):
        out_dtype = x.dtype
        compute_dtype = x.dtype          # match PyTorch: bf16 * float -> bf16
    else:
        out_dtype = jnp.float32          # int/bool * python float -> float32
        compute_dtype = jnp.float32

    total = math.prod(orig_shape) if orig_shape else 1
    if total == 0:
        return jnp.zeros(orig_shape, out_dtype)

    rows, cols = _choose_2d_layout(total, orig_shape)
    x2 = x.reshape(rows, cols)  # contiguous reshape: free, no HBM traffic

    in_item = jnp.dtype(x.dtype).itemsize
    out_item = jnp.dtype(out_dtype).itemsize
    itemsize = max(in_item, out_item)
    sublane = _sublane(in_item)

    # Column tiling only if a single row already exceeds the per-buffer budget.
    if cols * itemsize <= _TARGET_TILE_BYTES:
        tile_cols = cols
    else:
        tile_cols = max(_LANE, (_TARGET_TILE_BYTES // (itemsize * _LANE)) * _LANE)

    # Row tiling: megabyte-scale tiles, rounded to the sublane pack.
    row_budget = max(1, _TARGET_TILE_BYTES // (tile_cols * itemsize))
    if row_budget >= rows:
        tile_rows = rows
    else:
        tile_rows = max(sublane, (row_budget // sublane) * sublane)

    # If the whole slab fits in one tile but is nontrivial, split rows in two so
    # both TensorCores (v7x megacore) get a grid step.
    if (tile_rows == rows and tile_cols == cols
            and rows >= 2 * sublane and total * itemsize > (1 << 20)):
        half = -(-rows // 2)                    # ceil(rows / 2)
        half = -(-half // sublane) * sublane    # round up to sublane multiple
        if half < rows:
            tile_rows = half

    grid = (pl.cdiv(rows, tile_rows), pl.cdiv(cols, tile_cols))

    kernel = functools.partial(
        _scale_kernel, scale=float(scale_val), compute_dtype=compute_dtype)
    aliases = {0: 0} if (donate_input and x2.dtype == jnp.dtype(out_dtype)) else {}

    out2 = pl.pallas_call(
        kernel,
        out_shape=jax.ShapeDtypeStruct((rows, cols), out_dtype),
        grid=grid,
        in_specs=[pl.BlockSpec((tile_rows, tile_cols), lambda i, j: (i, j))],
        out_specs=pl.BlockSpec((tile_rows, tile_cols), lambda i, j: (i, j)),
        input_output_aliases=aliases,
        compiler_params=pltpu.CompilerParams(
            dimension_semantics=("parallel", "parallel"),
            vmem_limit_bytes=32 * 1024 * 1024,
        ),
    )(x2)

    return out2.reshape(orig_shape)


if __name__ == "__main__":
    key = jax.random.PRNGKey(0)
    # NCHW input consistent with typical conv-pipeline usage of Scale.
    x = jax.random.uniform(key, (2, 4, 16, 16), dtype=jnp.float32)

    y = scale(x, 255.0)
    y = jax.block_until_ready(y)

    # Correctness check against the reference semantics (x * 255).
    ref = x * 255.0
    assert y.shape == x.shape and y.dtype == x.dtype
    assert jnp.allclose(y, ref, rtol=1e-6, atol=1e-6)

    print("KERNEL_OK")
</pallas_src>

<mosaic_0001>
module attributes {stable_mosaic.version = 11 : i64} {
  func.func @_scale_kernel(%arg0: i32, %arg1: i32, %arg2: memref<8x256xf32, #tpu.memory_space<vmem>>, %arg3: memref<8x256xf32, #tpu.memory_space<vmem>>) attributes {dimension_semantics = [#tpu.dimension_semantics<parallel>, #tpu.dimension_semantics<parallel>], iteration_bounds = array<i64: 1, 1>, scalar_prefetch = 0 : i64, scratch_operands = 0 : i64, tpu.core_type = #tpu.core_type<tc>, window_params = [{transform_indices = @transform_0, window_bounds = array<i64: 8, 256>}, {transform_indices = @transform_1, window_bounds = array<i64: 8, 256>}]} {
    %c0 = arith.constant 0 : index
    %c0_0 = arith.constant 0 : index
    %0 = vector.load %arg2[%c0, %c0_0] : memref<8x256xf32, #tpu.memory_space<vmem>>, vector<8x256xf32>
    %cst = arith.constant 2.550000e+02 : f32
    %1 = vector.broadcast %cst : f32 to vector<8x256xf32>
    %2 = arith.mulf %0, %1 : vector<8x256xf32>
    %c0_1 = arith.constant 0 : index
    %c0_2 = arith.constant 0 : index
    %3 = vector.load %arg3[%c0_1, %c0_2] : memref<8x256xf32, #tpu.memory_space<vmem>>, vector<8x256xf32>
    tpu.vector_store %arg3[%c0_1, %c0_2], %2 {strides = array<i32>} : memref<8x256xf32, #tpu.memory_space<vmem>>, vector<8x256xf32>,
    return
  }
  func.func @transform_0(%arg0: i32, %arg1: i32) -> (i32, i32) {
    %c0_i32 = arith.constant 0 : i32
    return %arg0, %arg1 : i32, i32
  }
  func.func @transform_1(%arg0: i32, %arg1: i32) -> (i32, i32) {
    %c0_i32 = arith.constant 0 : i32
    return %arg0, %arg1 : i32, i32
  }
}

</mosaic_0001>

<bundles_post_ra>
// kernel: tpu_custom_call.1
= control target key start
LH: loop header
LB: loop body
LE: loop exit
PB: predicated region body
PF: predicated region fallthrough
CT: control target
= control target key end

     0   :  { %6 = vsyncpa [#allocation3], 0  ;;  %s128_s0 = inlined_call_operand.hbm [shape: f32[8,256], index: 0, kind: input, shape index: {}]   ;;  %s129_s1 = inlined_call_operand.hbm [shape: f32[8,256], index: 1, kind: output, shape index: {}]  }
   0x1   :  { %7 = vsyncpa [#allocation4], 0  ;;  %s92_s6 = smov [#allocation2]   ;;  %s44_s10 = scalar_lea.hbm %s128_s0, 256 }
   0x2   :  { %s14_s7 = sshll.u32 %s92_s6, 4  ;;  %p45_p0 = scmp.ne.s32.totalorder %s128_s0, %s44_s10  ;;  %s15_s7 = int_to_ptr.vmem [resolvable:$true] %s14_s7 }
   0x3   :  { %p48_p1 = scmp.lt.u32.totalorder %s44_s10, %s128_s0 }
   0x5   :  { %p50_p2 = pnand %p48_p1, %p45_p0 }
   0x7   :  { %53 = shalt.err (!%p50_p2)
}
   0x8   :  { %s54_s15 = scalar_lea.vmem %s15_s7, 256  ;;  %p59_p4 = scmp.lt.s32.totalorder %s15_s7, %s15_s7 }
   0x9   :  { %p55_p3 = scmp.ne.s32.totalorder %s15_s7, %s54_s15  ;;  %p60_p5 = scmp.lt.s32.totalorder %s54_s15, %s54_s15 }
   0xb   :  { %p61_p6 = por %p60_p5, %p59_p4 }
   0xd   :  { %p62_p7 = pnand %p61_p6, %p55_p3 }
   0xf   :  { %65 = shalt.err (!%p62_p7)
}
  0x10   :  { %17 = dma.hbm_to_vmem [thread:$0]  %s128_s0, 256, %s15_s7, [#allocation3]  }
  0x11   :  { %88 = dma.done.wait [#allocation3], 256  }
  0x12   :  { %89 = vsyncadd [#allocation3], 4294967040  ;;  %s93_s18 = smov [#allocation5]   ;;  %v21_v0 = vld [vmem:[#allocation2] sm:$0xff]  ;;  %v22_v1 = vld [vmem:[#allocation2 + $0x8] sm:$0xff] }
  0x13   :  { %s33_s19 = sshll.u32 %s93_s18, 4  ;;  %v23_v2 = vmul.f32 255.0, %v21_v0  ;;  %v24_v3 = vmul.f32 255.0, %v22_v1  ;;  %s34_s19 = int_to_ptr.vmem [resolvable:$true] %s33_s19 }
  0x14   :  { %s66_s20 = scalar_lea.vmem %s34_s19, 256  ;;  %p71_p9 = scmp.lt.s32.totalorder %s34_s19, %s34_s19 }
  0x15   :  { %25 = vst [vmem:[#allocation5] sm:$0xff] %v23_v2  ;;  %26 = vst [vmem:[#allocation5 + $0x8] sm:$0xff] %v24_v3  ;;  %p67_p8 = scmp.ne.s32.totalorder %s34_s19, %s66_s20  ;;  %p72_p10 = scmp.lt.s32.totalorder %s66_s20, %s66_s20 }
  0x17   :  { %p73_p11 = por %p72_p10, %p71_p9 }
  0x19   :  { %p74_p12 = pnand %p73_p11, %p67_p8 }
  0x1b   :  { %77 = shalt.err (!%p74_p12)
}
  0x1c   :  { %s78_s22 = scalar_lea.hbm %s129_s1, 256 }
  0x1d   :  { %p79_p13 = scmp.ne.s32.totalorder %s129_s1, %s78_s22  ;;  %p82_p0 = scmp.lt.u32.totalorder %s78_s22, %s129_s1 }
  0x1f   :  { %p84_p1 = pnand %p82_p0, %p79_p13 }
  0x21   :  { %87 = shalt.err (!%p84_p1)
}
  0x22   :  { %36 = dma.vmem_to_hbm [thread:$0]  %s34_s19, 256, %s129_s1, [#allocation4]  }
  0x23   :  { %90 = dma.done.wait [#allocation4], 256  }
  0x24   :  { %91 = vsyncadd [#allocation4], 4294967040 }
  0x25   :  { %40 = vsyncpa [#allocation3], 1 }
  0x26   :  { %41 = vsyncpa [#allocation4], 1 }

</bundles_post_ra>
